<compile_context>
chip_gen: v7x
topology: tpu7x:2x2x1
jax: 0.10.0
libtpu: 0.0.40
codegen_flags: <defaults>
</compile_context>

<pallas_src>
import jax
import jax.numpy as jnp
import numpy as np
from jax.experimental import pallas as pl
from jax.experimental.pallas import tpu as pltpu


def _round_up(x: int, m: int) -> int:
    return (x + m - 1) // m * m


def _vmem_capacity_bytes() -> int:
    try:
        return int(pltpu.get_tpu_info().vmem_capacity_bytes)
    except Exception:
        return 64 << 20          # conservative: v7x per-core VMEM


# --------------------------------------------------------------------------------
# Prologue: per-row softmax (bf16) + logsumexp (f32).  Row-tiled, fully parallel.
# --------------------------------------------------------------------------------
def _softmax_lse_kernel(logits_ref,   # VMEM (TB, C_pad) f32
                        s_ref,        # out VMEM (TB, C_pad) bf16
                        lse_ref):     # out VMEM (TB, 1) f32
    x = logits_ref[...]
    m = jnp.max(x, axis=1, keepdims=True)
    e = jnp.exp(x - m)
    ssum = jnp.sum(e, axis=1, keepdims=True)
    s_ref[...] = (e * (1.0 / ssum)).astype(s_ref.dtype)   # exact divide (once/row)
    lse_ref[...] = m + jnp.log(ssum)


# --------------------------------------------------------------------------------
# Main kernel: neighbor mean (bf16 MXU, f32 accumulate) + refined targets + CE loss.
# grid = (row tiles [parallel], K tiles over the neighbor axis [arbitrary]).
# --------------------------------------------------------------------------------
def _refine_kernel(params_ref,    # SMEM (1,) f32 : [ce_alpha]
                   mask_ref,      # VMEM (TB, TK) bf16 : dedup'd neighbor mask tile
                   s_u_ref,       # VMEM (TK, C_pad) bf16 : softmax(logits) K tile
                   logits_ref,    # VMEM (TB, C_pad) f32 : logits row tile (CE)
                   lse_ref,       # VMEM (TB, 1) f32 : per-row logsumexp
                   invc_ref,      # VMEM (TB, 1) f32 : 1 / max(neighbor_count, 1)
                   tgt_ref,       # VMEM (TB, 1) i32 : cluster targets (-1 on pad)
                   refined_ref,   # out VMEM (TB, C_pad) f32
                   rowloss_ref,   # out VMEM (TB, 1) f32
                   acc_ref):      # scratch VMEM (TB, C_pad) f32 : neighbor-sum acc
    k = pl.program_id(1)

    @pl.when(k == 0)
    def _():
        acc_ref[...] = jnp.zeros_like(acc_ref)

    # bf16 x bf16 -> f32 accumulate on the MXU (mask entries are exact 0/1 in bf16).
    acc_ref[...] += jnp.dot(mask_ref[...], s_u_ref[...],
                            preferred_element_type=jnp.float32)

    @pl.when(k == pl.num_programs(1) - 1)
    def _():
        alpha = params_ref[0]
        neigh = acc_ref[...] * invc_ref[...]                      # neighbor mean
        cols = jax.lax.broadcasted_iota(jnp.int32, refined_ref.shape, 1)
        onehot = (cols == tgt_ref[...]).astype(jnp.float32)       # pad rows (tgt=-1) -> 0
        refined = alpha * onehot + (1.0 - alpha) * neigh
        refined_ref[...] = refined
        # CE with log-softmax = logits - logsumexp (reuses the stored lse: no exp/log here).
        logp = logits_ref[...] - lse_ref[...]
        rowloss_ref[...] = jnp.sum(-refined * logp, axis=1, keepdims=True)


@jax.jit
def _refine_labels_impl(inputs_logits, targets, indexes, neighbors, ce_alpha):
    B, C = inputs_logits.shape
    logits = inputs_logits.astype(jnp.float32)
    indexes = indexes.astype(jnp.int32)
    targets = targets.astype(jnp.int32)

    # --- on-device replacement for torch.unique / batch2unique / mask glue ---
    # Each duplicate batch entry (same sample index) must contribute exactly once to
    # the neighbor mean: weight column j by "j is the first occurrence of indexes[j]".
    same = indexes[:, None] == indexes[None, :]                          # (B, B)
    is_first = (jnp.argmax(same, axis=1) == jnp.arange(B))               # (B,)
    mask = (neighbors.astype(jnp.float32)[indexes][:, indexes]
            * is_first[None, :].astype(jnp.float32))                     # (B, B) 0/1
    counts = jnp.sum(mask, axis=1, keepdims=True)
    inv_cnt = 1.0 / jnp.maximum(counts, 1.0)                             # exact, once/row

    # --- lane-dense padding ---
    b_pad = _round_up(B, 128)
    c_pad = _round_up(C, 128)
    tb = 256 if b_pad % 256 == 0 else 128        # fills the 256x256 MXU on v6e/v7x
    tk = tb
    pad_b, pad_c = b_pad - B, c_pad - C

    # padded logit columns/rows get a large negative (NOT zero) so softmax/lse stay exact
    logits_p = jnp.pad(logits, ((0, pad_b), (0, pad_c)), constant_values=-1e30)
    mask_p = jnp.pad(mask, ((0, pad_b), (0, pad_b))).astype(jnp.bfloat16)
    invc_p = jnp.pad(inv_cnt, ((0, pad_b), (0, 0)), constant_values=1.0)
    tgt_p = jnp.pad(targets, (0, pad_b), constant_values=-1).reshape(b_pad, 1)
    params = jnp.reshape(jnp.asarray(ce_alpha, jnp.float32), (1,))

    # chip-aware VMEM budget (~75% of physical), with a small floor
    cap = _vmem_capacity_bytes()
    est = (2 * tb * tk * 2            # mask tile (bf16, double buffered)
           + 2 * tk * c_pad * 2       # softmax K tile (bf16)
           + 4 * tb * c_pad * 4       # logits in + refined out tiles (f32)
           + tb * c_pad * 4           # accumulator scratch
           + 32 * tb * 4)             # small per-row vectors
    vmem_limit = int(min(cap * 3 // 4, max(2 * est, 8 << 20)))

    # ---- prologue: softmax (bf16) + logsumexp, row-parallel -------------------
    s_u, lse = pl.pallas_call(
        _softmax_lse_kernel,
        grid=(b_pad // tb,),
        in_specs=[pl.BlockSpec((tb, c_pad), lambda i: (i, 0))],
        out_specs=[pl.BlockSpec((tb, c_pad), lambda i: (i, 0)),
                   pl.BlockSpec((tb, 1), lambda i: (i, 0))],
        out_shape=[jax.ShapeDtypeStruct((b_pad, c_pad), jnp.bfloat16),
                   jax.ShapeDtypeStruct((b_pad, 1), jnp.float32)],
        compiler_params=pltpu.CompilerParams(
            dimension_semantics=("parallel",),
            vmem_limit_bytes=vmem_limit),
    )(logits_p)

    # ---- main: neighbor mean + refined targets + per-row CE loss --------------
    refined_p, rowloss = pl.pallas_call(
        _refine_kernel,
        grid=(b_pad // tb, b_pad // tk),
        in_specs=[
            pl.BlockSpec(memory_space=pltpu.MemorySpace.SMEM),      # [ce_alpha]
            pl.BlockSpec((tb, tk), lambda i, k: (i, k)),            # mask (bf16)
            pl.BlockSpec((tk, c_pad), lambda i, k: (k, 0)),         # softmax (bf16)
            pl.BlockSpec((tb, c_pad), lambda i, k: (i, 0)),         # logits (f32)
            pl.BlockSpec((tb, 1), lambda i, k: (i, 0)),             # logsumexp
            pl.BlockSpec((tb, 1), lambda i, k: (i, 0)),             # 1/count
            pl.BlockSpec((tb, 1), lambda i, k: (i, 0)),             # targets
        ],
        out_specs=[
            pl.BlockSpec((tb, c_pad), lambda i, k: (i, 0)),         # refined
            pl.BlockSpec((tb, 1), lambda i, k: (i, 0)),             # per-row loss
        ],
        out_shape=[jax.ShapeDtypeStruct((b_pad, c_pad), jnp.float32),
                   jax.ShapeDtypeStruct((b_pad, 1), jnp.float32)],
        scratch_shapes=[pltpu.VMEM((tb, c_pad), jnp.float32)],
        compiler_params=pltpu.CompilerParams(
            dimension_semantics=("parallel", "arbitrary"),
            vmem_limit_bytes=vmem_limit),
    )(params, mask_p, s_u, logits_p, lse, invc_p, tgt_p)

    loss = jnp.sum(rowloss[:B, 0]) / B
    return loss, refined_p[:B, :C]


def refine_labels_forward(inputs, inputs_logits, targets, indexes,
                          neighbors, neighbor_dists, ce_alpha=0.1):
    """Mirrors RefineLabels.forward (default path). Returns (loss_ce, refined_targets).

    `inputs` (features) and `neighbor_dists` have no effect on the default-path
    loss (F.normalize(inputs) is dead code for option=0), so no device work is
    launched for them.
    """
    # TODO(synk): option=1 (distance-weighted neighbors), topk_s != 0 gating, and the
    #             use_part / use_meanteacher / extra_option==2 branches are not implemented.
    # TODO(synk): for very large num_clusters, tile the class axis (c_pad) as well so the
    #             (TB, C_pad) blocks stay within the v7x 64 MiB VMEM budget.
    del inputs, neighbor_dists
    return _refine_labels_impl(inputs_logits, targets, indexes, neighbors, ce_alpha)


def _reference(inputs_logits, targets, indexes, neighbors, ce_alpha):
    """Pure-numpy replica of get_refinelabels(option=0, topk_s=0) + CE loss."""
    logits = np.asarray(inputs_logits, np.float64)
    idx = np.asarray(indexes)
    B, C = logits.shape
    uniq = np.unique(idx)
    b2u = np.array([np.nonzero(idx == u)[0][0] for u in uniq])
    lu = logits[b2u]
    s = np.exp(lu - lu.max(1, keepdims=True))
    s = s / s.sum(1, keepdims=True)
    mask = np.asarray(neighbors)[idx][:, uniq].astype(np.float64)
    neigh = (mask @ s) / mask.sum(1, keepdims=True)
    onehot = np.eye(C)[np.asarray(targets)]
    refined = ce_alpha * onehot + (1 - ce_alpha) * neigh
    z = logits - logits.max(1, keepdims=True)
    logp = z - np.log(np.exp(z).sum(1, keepdims=True))
    loss = (-refined * logp).sum(1).mean()
    return loss, refined


if __name__ == "__main__":
    # deterministic "module state" and inputs (RefineLabels(num_features=32, num_samples=32))
    B, C, N, F = 8, 120, 32, 32     # batch, num clusters (non-128 to exercise C padding),
                                    # num samples (buffer side), feature dim

    key = jax.random.PRNGKey(0)
    k1, k2, k3, k4, k5 = jax.random.split(key, 5)

    inputs = jax.random.normal(k1, (B, F), dtype=jnp.float32)          # features (unused by loss)
    inputs_logits = jax.random.normal(k2, (B, C), dtype=jnp.float32)   # memory-bank logits
    targets = jax.random.randint(k3, (B,), 0, C, dtype=jnp.int32)      # cluster labels
    indexes = jnp.array([3, 7, 7, 12, 20, 25, 30, 5], dtype=jnp.int32) # sample indices (with duplicate)

    # module buffers: binary neighbor graph (+ self loops) and distances (unused, option=0)
    neigh_rand = jax.random.uniform(k4, (N, N))
    neighbors = (neigh_rand > 0.6).astype(jnp.float32)
    neighbors = jnp.maximum(neighbors, neighbors.T)
    neighbors = jnp.maximum(neighbors, jnp.eye(N, dtype=jnp.float32))
    neighbor_dists = jax.random.uniform(k5, (N, N), dtype=jnp.float32)

    # second call changes alpha only -> same compiled kernel (alpha lives in SMEM)
    for alpha in (0.1, 0.35):
        loss, refined = refine_labels_forward(inputs, inputs_logits, targets, indexes,
                                              neighbors, neighbor_dists, ce_alpha=alpha)
        loss = jax.block_until_ready(loss)
        refined = jax.block_until_ready(refined)

        ref_loss, ref_refined = _reference(np.asarray(inputs_logits), np.asarray(targets),
                                           np.asarray(indexes), np.asarray(neighbors), alpha)
        # tolerances account for the bf16 softmax / bf16 MXU neighbor-mean path
        np.testing.assert_allclose(np.asarray(refined), ref_refined, rtol=1e-2, atol=5e-3)
        np.testing.assert_allclose(float(loss), float(ref_loss), rtol=1e-2, atol=5e-3)

    print("KERNEL_OK")
</pallas_src>

<mosaic_0001>
module attributes {stable_mosaic.version = 11 : i64} {
  func.func @_softmax_lse_kernel(%arg0: i32, %arg1: memref<128x128xf32, #tpu.memory_space<vmem>>, %arg2: memref<128x128xbf16, #tpu.memory_space<vmem>>, %arg3: memref<128x1xf32, #tpu.memory_space<vmem>>) attributes {dimension_semantics = [#tpu.dimension_semantics<parallel>], iteration_bounds = array<i64: 1>, scalar_prefetch = 0 : i64, scratch_operands = 0 : i64, tpu.core_type = #tpu.core_type<tc>, window_params = [{transform_indices = @transform_0, window_bounds = array<i64: 128, 128>}, {transform_indices = @transform_1, window_bounds = array<i64: 128, 128>}, {transform_indices = @transform_2, window_bounds = array<i64: 128, 1>}]} {
    %c0 = arith.constant 0 : index
    %c0_0 = arith.constant 0 : index
    %0 = vector.load %arg1[%c0, %c0_0] : memref<128x128xf32, #tpu.memory_space<vmem>>, vector<128x128xf32>
    %cst = arith.constant dense<0xFF800000> : vector<128xf32>
    %1 = vector.multi_reduction <maximumf>, %0, %cst [1] : vector<128x128xf32> to vector<128xf32>
    %2 = vector.shape_cast %1 : vector<128xf32> to vector<128x1xf32>
    %3 = vector.broadcast %2 : vector<128x1xf32> to vector<128x128xf32>
    %4 = arith.subf %0, %3 : vector<128x128xf32>
    %5 = math.exp %4 : vector<128x128xf32>
    %cst_1 = arith.constant dense<0.000000e+00> : vector<128xf32>
    %6 = vector.multi_reduction <add>, %5, %cst_1 [1] : vector<128x128xf32> to vector<128xf32>
    %7 = vector.shape_cast %6 : vector<128xf32> to vector<128x1xf32>
    %cst_2 = arith.constant 1.000000e+00 : f32
    %8 = vector.broadcast %cst_2 : f32 to vector<128x1xf32>
    %9 = arith.divf %8, %7 : vector<128x1xf32>
    %10 = vector.broadcast %9 : vector<128x1xf32> to vector<128x128xf32>
    %11 = arith.mulf %5, %10 : vector<128x128xf32>
    %12 = arith.truncf %11 : vector<128x128xf32> to vector<128x128xbf16>
    %c0_3 = arith.constant 0 : index
    %c0_4 = arith.constant 0 : index
    %13 = vector.load %arg2[%c0_3, %c0_4] : memref<128x128xbf16, #tpu.memory_space<vmem>>, vector<128x128xbf16>
    tpu.vector_store %arg2[%c0_3, %c0_4], %12 {strides = array<i32>} : memref<128x128xbf16, #tpu.memory_space<vmem>>, vector<128x128xbf16>,
    %14 = math.log %7 : vector<128x1xf32>
    %15 = arith.addf %2, %14 : vector<128x1xf32>
    %c0_5 = arith.constant 0 : index
    %c0_6 = arith.constant 0 : index
    %16 = vector.load %arg3[%c0_5, %c0_6] : memref<128x1xf32, #tpu.memory_space<vmem>>, vector<128x1xf32>
    tpu.vector_store %arg3[%c0_5, %c0_6], %15 {strides = array<i32>} : memref<128x1xf32, #tpu.memory_space<vmem>>, vector<128x1xf32>,
    return
  }
  func.func @transform_0(%arg0: i32) -> (i32, i32) {
    %c0_i32 = arith.constant 0 : i32
    %c0_i32_0 = arith.constant 0 : i32
    return %arg0, %c0_i32 : i32, i32
  }
  func.func @transform_1(%arg0: i32) -> (i32, i32) {
    %c0_i32 = arith.constant 0 : i32
    %c0_i32_0 = arith.constant 0 : i32
    return %arg0, %c0_i32 : i32, i32
  }
  func.func @transform_2(%arg0: i32) -> (i32, i32) {
    %c0_i32 = arith.constant 0 : i32
    %c0_i32_0 = arith.constant 0 : i32
    return %arg0, %c0_i32 : i32, i32
  }
}

module attributes {stable_mosaic.version = 11 : i64} {
  func.func @_refine_kernel(%arg0: i32, %arg1: i32, %arg2: memref<1xf32, #tpu.memory_space<smem>>, %arg3: memref<128x128xbf16, #tpu.memory_space<vmem>>, %arg4: memref<128x128xbf16, #tpu.memory_space<vmem>>, %arg5: memref<128x128xf32, #tpu.memory_space<vmem>>, %arg6: memref<128x1xf32, #tpu.memory_space<vmem>>, %arg7: memref<128x1xf32, #tpu.memory_space<vmem>>, %arg8: memref<128x1xi32, #tpu.memory_space<vmem>>, %arg9: memref<128x128xf32, #tpu.memory_space<vmem>>, %arg10: memref<128x1xf32, #tpu.memory_space<vmem>>, %arg11: memref<128x128xf32, #tpu.memory_space<vmem>>) attributes {dimension_semantics = [#tpu.dimension_semantics<parallel>, #tpu.dimension_semantics<arbitrary>], iteration_bounds = array<i64: 1, 1>, scalar_prefetch = 0 : i64, scratch_operands = 1 : i64, tpu.core_type = #tpu.core_type<tc>, window_params = [{transform_indices = @transform_0, window_bounds = array<i64: 1>}, {transform_indices = @transform_1, window_bounds = array<i64: 128, 128>}, {transform_indices = @transform_2, window_bounds = array<i64: 128, 128>}, {transform_indices = @transform_3, window_bounds = array<i64: 128, 128>}, {transform_indices = @transform_4, window_bounds = array<i64: 128, 1>}, {transform_indices = @transform_5, window_bounds = array<i64: 128, 1>}, {transform_indices = @transform_6, window_bounds = array<i64: 128, 1>}, {transform_indices = @transform_7, window_bounds = array<i64: 128, 128>}, {transform_indices = @transform_8, window_bounds = array<i64: 128, 1>}]} {
    %c0_i32 = arith.constant 0 : i32
    %0 = arith.cmpi eq, %arg1, %c0_i32 : i32
    %1 = arith.extui %0 : i1 to i32
    %c0_i32_0 = arith.constant 0 : i32
    %2 = arith.cmpi ne, %1, %c0_i32_0 : i32
    scf.if %2 {
      %cst_10 = arith.constant 0.000000e+00 : f32
      %12 = vector.broadcast %cst_10 : f32 to vector<128x128xf32>
      %c0_11 = arith.constant 0 : index
      %c0_12 = arith.constant 0 : index
      %13 = vector.load %arg11[%c0_11, %c0_12] : memref<128x128xf32, #tpu.memory_space<vmem>>, vector<128x128xf32>
      tpu.vector_store %arg11[%c0_11, %c0_12], %12 {strides = array<i32>} : memref<128x128xf32, #tpu.memory_space<vmem>>, vector<128x128xf32>,
    } else {
    }
    %c0 = arith.constant 0 : index
    %c0_1 = arith.constant 0 : index
    %3 = vector.load %arg11[%c0, %c0_1] : memref<128x128xf32, #tpu.memory_space<vmem>>, vector<128x128xf32>
    %c0_2 = arith.constant 0 : index
    %c0_3 = arith.constant 0 : index
    %4 = vector.load %arg3[%c0_2, %c0_3] : memref<128x128xbf16, #tpu.memory_space<vmem>>, vector<128x128xbf16>
    %c0_4 = arith.constant 0 : index
    %c0_5 = arith.constant 0 : index
    %5 = vector.load %arg4[%c0_4, %c0_5] : memref<128x128xbf16, #tpu.memory_space<vmem>>, vector<128x128xbf16>
    %cst = arith.constant dense<0.000000e+00> : vector<128x128xf32>
    %6 = tpu.matmul %4, %5, %cst {dimension_numbers = #tpu.dot_dimension_numbers<[1], [0], [0], [1], [0, 0, 1, 1], [], []>} : vector<128x128xbf16>, vector<128x128xbf16>, vector<128x128xf32> -> vector<128x128xf32>
    %7 = arith.addf %3, %6 : vector<128x128xf32>
    %c0_6 = arith.constant 0 : index
    %c0_7 = arith.constant 0 : index
    %8 = vector.load %arg11[%c0_6, %c0_7] : memref<128x128xf32, #tpu.memory_space<vmem>>, vector<128x128xf32>
    tpu.vector_store %arg11[%c0_6, %c0_7], %7 {strides = array<i32>} : memref<128x128xf32, #tpu.memory_space<vmem>>, vector<128x128xf32>,
    %c0_i32_8 = arith.constant 0 : i32
    %9 = arith.cmpi eq, %arg1, %c0_i32_8 : i32
    %10 = arith.extui %9 : i1 to i32
    %c0_i32_9 = arith.constant 0 : i32
    %11 = arith.cmpi ne, %10, %c0_i32_9 : i32
    scf.if %11 {
      %c0_10 = arith.constant 0 : index
      %12 = memref.load %arg2[%c0_10] : memref<1xf32, #tpu.memory_space<smem>>
      %c0_11 = arith.constant 0 : index
      %c0_12 = arith.constant 0 : index
      %13 = vector.load %arg11[%c0_11, %c0_12] : memref<128x128xf32, #tpu.memory_space<vmem>>, vector<128x128xf32>
      %c0_13 = arith.constant 0 : index
      %c0_14 = arith.constant 0 : index
      %14 = vector.load %arg7[%c0_13, %c0_14] : memref<128x1xf32, #tpu.memory_space<vmem>>, vector<128x1xf32>
      %15 = vector.broadcast %14 : vector<128x1xf32> to vector<128x128xf32>
      %16 = arith.mulf %13, %15 : vector<128x128xf32>
      %17 = tpu.iota {dimensions = array<i32: 1>} : vector<128x128xi32>
      %c0_15 = arith.constant 0 : index
      %c0_16 = arith.constant 0 : index
      %18 = vector.load %arg8[%c0_15, %c0_16] : memref<128x1xi32, #tpu.memory_space<vmem>>, vector<128x1xi32>
      %19 = vector.broadcast %18 : vector<128x1xi32> to vector<128x128xi32>
      %20 = arith.cmpi eq, %17, %19 : vector<128x128xi32>
      %21 = arith.extui %20 : vector<128x128xi1> to vector<128x128xi32>
      %22 = arith.sitofp %21 : vector<128x128xi32> to vector<128x128xf32>
      %23 = vector.broadcast %12 : f32 to vector<128x128xf32>
      %24 = arith.mulf %23, %22 : vector<128x128xf32>
      %cst_17 = arith.constant 1.000000e+00 : f32
      %25 = arith.subf %cst_17, %12 : f32
      %26 = vector.broadcast %25 : f32 to vector<128x128xf32>
      %27 = arith.mulf %26, %16 : vector<128x128xf32>
      %28 = arith.addf %24, %27 : vector<128x128xf32>
      %c0_18 = arith.constant 0 : index
      %c0_19 = arith.constant 0 : index
      %29 = vector.load %arg9[%c0_18, %c0_19] : memref<128x128xf32, #tpu.memory_space<vmem>>, vector<128x128xf32>
      tpu.vector_store %arg9[%c0_18, %c0_19], %28 {strides = array<i32>} : memref<128x128xf32, #tpu.memory_space<vmem>>, vector<128x128xf32>,
      %c0_20 = arith.constant 0 : index
      %c0_21 = arith.constant 0 : index
      %30 = vector.load %arg5[%c0_20, %c0_21] : memref<128x128xf32, #tpu.memory_space<vmem>>, vector<128x128xf32>
      %c0_22 = arith.constant 0 : index
      %c0_23 = arith.constant 0 : index
      %31 = vector.load %arg6[%c0_22, %c0_23] : memref<128x1xf32, #tpu.memory_space<vmem>>, vector<128x1xf32>
      %32 = vector.broadcast %31 : vector<128x1xf32> to vector<128x128xf32>
      %33 = arith.subf %30, %32 : vector<128x128xf32>
      %cst_24 = arith.constant 0.000000e+00 : f32
      %34 = vector.broadcast %cst_24 : f32 to vector<128x128xf32>
      %35 = arith.subf %34, %28 : vector<128x128xf32>
      %36 = arith.mulf %35, %33 : vector<128x128xf32>
      %cst_25 = arith.constant dense<0.000000e+00> : vector<128xf32>
      %37 = vector.multi_reduction <add>, %36, %cst_25 [1] : vector<128x128xf32> to vector<128xf32>
      %38 = vector.shape_cast %37 : vector<128xf32> to vector<128x1xf32>
      %c0_26 = arith.constant 0 : index
      %c0_27 = arith.constant 0 : index
      %39 = vector.load %arg10[%c0_26, %c0_27] : memref<128x1xf32, #tpu.memory_space<vmem>>, vector<128x1xf32>
      tpu.vector_store %arg10[%c0_26, %c0_27], %38 {strides = array<i32>} : memref<128x1xf32, #tpu.memory_space<vmem>>, vector<128x1xf32>,
    } else {
    }
    return
  }
  func.func @transform_0(%arg0: i32, %arg1: i32) -> i32 {
    %c0_i32 = arith.constant 0 : i32
    %c0_i32_0 = arith.constant 0 : i32
    return %c0_i32 : i32
  }
  func.func @transform_1(%arg0: i32, %arg1: i32) -> (i32, i32) {
    %c0_i32 = arith.constant 0 : i32
    return %arg0, %arg1 : i32, i32
  }
  func.func @transform_2(%arg0: i32, %arg1: i32) -> (i32, i32) {
    %c0_i32 = arith.constant 0 : i32
    %c0_i32_0 = arith.constant 0 : i32
    return %arg1, %c0_i32 : i32, i32
  }
  func.func @transform_3(%arg0: i32, %arg1: i32) -> (i32, i32) {
    %c0_i32 = arith.constant 0 : i32
    %c0_i32_0 = arith.constant 0 : i32
    return %arg0, %c0_i32 : i32, i32
  }
  func.func @transform_4(%arg0: i32, %arg1: i32) -> (i32, i32) {
    %c0_i32 = arith.constant 0 : i32
    %c0_i32_0 = arith.constant 0 : i32
    return %arg0, %c0_i32 : i32, i32
  }
  func.func @transform_5(%arg0: i32, %arg1: i32) -> (i32, i32) {
    %c0_i32 = arith.constant 0 : i32
    %c0_i32_0 = arith.constant 0 : i32
    return %arg0, %c0_i32 : i32, i32
  }
  func.func @transform_6(%arg0: i32, %arg1: i32) -> (i32, i32) {
    %c0_i32 = arith.constant 0 : i32
    %c0_i32_0 = arith.constant 0 : i32
    return %arg0, %c0_i32 : i32, i32
  }
  func.func @transform_7(%arg0: i32, %arg1: i32) -> (i32, i32) {
    %c0_i32 = arith.constant 0 : i32
    %c0_i32_0 = arith.constant 0 : i32
    return %arg0, %c0_i32 : i32, i32
  }
  func.func @transform_8(%arg0: i32, %arg1: i32) -> (i32, i32) {
    %c0_i32 = arith.constant 0 : i32
    %c0_i32_0 = arith.constant 0 : i32
    return %arg0, %c0_i32 : i32, i32
  }
}

</mosaic_0001>

<bundles_post_ra>
// kernel: _refine_labels_impl.2
= control target key start
LH: loop header
LB: loop body
LE: loop exit
PB: predicated region body
PF: predicated region fallthrough
CT: control target
= control target key end

     0   :  { %vm314_vm0 = vcmask 7168   ;;  %s817_s0 = inlined_call_operand.vmem [shape: f32[128,128], index: 0, kind: input, shape index: {}]   ;;  %s818_s2 = inlined_call_operand.vmem [shape: f32[128,1], index: 2, kind: output, shape index: {1}]   ;;  %s819_s1 = inlined_call_operand.vmem [shape: bf16[128,128], index: 1, kind: output, shape index: {0}]  }
   0x1   :  { %v10_v0 = vld [vmem:[%s817_s0] sm:$0xff]  ;;  %v12_v1 = vld [vmem:[%s817_s0 + $0x10] sm:$0xff]  ;;  %v11_v2 = vld [vmem:[%s817_s0 + $0x8] sm:$0xff] }
   0x2   :  { %26 = vmax.xlane.f32.xlu0 %v10_v0  ;;  %30 = vmax.xlane.f32.xlu1 %v12_v1  ;;  %v13_v3 = vld [vmem:[%s817_s0 + $0x18] sm:$0xff]  ;;  %v14_v4 = vld [vmem:[%s817_s0 + $0x20] sm:$0xff]  ;;  %v15_v5 = vld [vmem:[%s817_s0 + $0x28] sm:$0xff] }
   0x3   :  { %v16_v6 = vld [vmem:[%s817_s0 + $0x30] sm:$0xff]  ;;  %v17_v7 = vld [vmem:[%s817_s0 + $0x38] sm:$0xff]  ;;  %v18_v8 = vld [vmem:[%s817_s0 + $0x40] sm:$0xff] }
   0x4   :  { %v19_v9 = vld [vmem:[%s817_s0 + $0x48] sm:$0xff]  ;;  %v562_v10 = vld [vmem:[%s817_s0 + $0x50] sm:$0xff]  ;;  %v567_v11 = vld [vmem:[%s817_s0 + $0x58] sm:$0xff] }
   0x5   :  { %v574_v12 = vld [vmem:[%s817_s0 + $0x60] sm:$0xff]  ;;  %v579_v13 = vld [vmem:[%s817_s0 + $0x68] sm:$0xff]  ;;  %v586_v14 = vld [vmem:[%s817_s0 + $0x70] sm:$0xff] }
   0x6   :  { %28 = vmax.xlane.f32.xlu0 %v11_v2  ;;  %32 = vmax.xlane.f32.xlu1 %v13_v3  ;;  %v591_v15 = vld [vmem:[%s817_s0 + $0x78] sm:$0xff] }
   0xa   :  { %34 = vmax.xlane.f32.xlu0 %v14_v4  ;;  %36 = vmax.xlane.f32.xlu1 %v15_v5 }
   0xe   :  { %38 = vmax.xlane.f32.xlu0 %v16_v6  ;;  %40 = vmax.xlane.f32.xlu1 %v17_v7 }
  0x12   :  { %42 = vmax.xlane.f32.xlu0 %v18_v8  ;;  %44 = vmax.xlane.f32.xlu1 %v19_v9 }
  0x16   :  { %46 = vmax.xlane.f32.xlu0 %v562_v10  ;;  %48 = vmax.xlane.f32.xlu1 %v567_v11 }
  0x1a   :  { %50 = vmax.xlane.f32.xlu0 %v574_v12  ;;  %52 = vmax.xlane.f32.xlu1 %v579_v13 }
  0x1e   :  { %54 = vmax.xlane.f32.xlu0 %v586_v14  ;;  %56 = vmax.xlane.f32.xlu1 %v591_v15 }
  0x8f   :  { %v595_v16 = vpop.xlane.xlu0 %26  ;;  %v597_v17 = vpop.xlane.xlu1 %30 }
  0x90   :  { %v58_v18 = vsub.f32 %v10_v0, %v595_v16  ;;  %v60_v19 = vsub.f32 %v12_v1, %v597_v17 }
  0x92   :  { %v74_v20 = vmul.f32 1.442695, %v58_v18  ;;  %v78_v21 = vmul.f32 1.442695, %v60_v19 }
  0x93   :  { %v601_v22 = vpop.xlane.xlu0 %28  ;;  %v603_v23 = vpop.xlane.xlu1 %32 }
  0x94   :  { %418 = vpow2.f32 %v74_v20  ;;  %v59_v24 = vsub.f32 %v11_v2, %v601_v22  ;;  %v61_v25 = vsub.f32 %v13_v3, %v603_v23 }
  0x95   :  { %420 = vpow2.f32 %v78_v21 }
  0x96   :  { %v76_v26 = vmul.f32 1.442695, %v59_v24  ;;  %v80_v27 = vmul.f32 1.442695, %v61_v25 }
  0x97   :  { %v607_v28 = vpop.xlane.xlu0 %34  ;;  %v609_v29 = vpop.xlane.xlu1 %36 }
  0x98   :  { %422 = vpow2.f32 %v76_v26  ;;  %v62_v30 = vsub.f32 %v14_v4, %v607_v28  ;;  %v63_v31 = vsub.f32 %v15_v5, %v609_v29 }
  0x99   :  { %424 = vpow2.f32 %v80_v27 }
  0x9a   :  { %v82_v32 = vmul.f32 1.442695, %v62_v30  ;;  %v84_v33 = vmul.f32 1.442695, %v63_v31 }
  0x9b   :  { %v613_v34 = vpop.xlane.xlu0 %38  ;;  %v615_v35 = vpop.xlane.xlu1 %40 }
  0x9c   :  { %426 = vpow2.f32 %v82_v32  ;;  %v64_v36 = vsub.f32 %v16_v6, %v613_v34  ;;  %v65_v37 = vsub.f32 %v17_v7, %v615_v35 }
  0x9d   :  { %428 = vpow2.f32 %v84_v33 }
  0x9e   :  { %v619_v38 = vpop.eup %418  ;;  %v86_v39 = vmul.f32 1.442695, %v64_v36  ;;  %v88_v40 = vmul.f32 1.442695, %v65_v37 }
  0x9f   :  { %106 = vadd.xlane.f32.xlu0 %v619_v38  ;;  %v622_v41 = vpop.xlane.xlu0 %42  ;;  %v624_v42 = vpop.xlane.xlu1 %44 }
  0xa0   :  { %v626_v43 = vpop.eup %420  ;;  %430 = vpow2.f32 %v86_v39  ;;  %v66_v44 = vsub.f32 %v18_v8, %v622_v41  ;;  %v67_v45 = vsub.f32 %v19_v9, %v624_v42 }
  0xa1   :  { %432 = vpow2.f32 %v88_v40 }
  0xa2   :  { %v630_v46 = vpop.eup %422  ;;  %v90_v47 = vmul.f32 1.442695, %v66_v44  ;;  %v92_v48 = vmul.f32 1.442695, %v67_v45 }
  0xa3   :  { %110 = vadd.xlane.f32.xlu0 %v626_v43  ;;  %108 = vadd.xlane.f32.xlu1 %v630_v46  ;;  %v634_v49 = vpop.xlane.xlu0 %46  ;;  %v636_v50 = vpop.xlane.xlu1 %48 }
  0xa4   :  { %v638_v51 = vpop.eup %424  ;;  %434 = vpow2.f32 %v90_v47  ;;  %v68_v52 = vsub.f32 %v562_v10, %v634_v49  ;;  %v69_v53 = vsub.f32 %v567_v11, %v636_v50 }
  0xa5   :  { %436 = vpow2.f32 %v92_v48 }
  0xa6   :  { %v644_v54 = vpop.eup %426  ;;  %v94_v55 = vmul.f32 1.442695, %v68_v52  ;;  %v96_v56 = vmul.f32 1.442695, %v69_v53 }
  0xa7   :  { %112 = vadd.xlane.f32.xlu1 %v638_v51  ;;  %114 = vadd.xlane.f32.xlu0 %v644_v54  ;;  %v648_v57 = vpop.xlane.xlu0 %50  ;;  %v650_v58 = vpop.xlane.xlu1 %52 }
  0xa8   :  { %v652_v59 = vpop.eup %428  ;;  %438 = vpow2.f32 %v94_v55  ;;  %v70_v60 = vsub.f32 %v574_v12, %v648_v57  ;;  %v71_v61 = vsub.f32 %v579_v13, %v650_v58 }
  0xa9   :  { %440 = vpow2.f32 %v96_v56 }
  0xaa   :  { %v658_v62 = vpop.eup %430  ;;  %v98_v63 = vmul.f32 1.442695, %v70_v60  ;;  %v100_v0 = vmul.f32 1.442695, %v71_v61 }
  0xab   :  { %116 = vadd.xlane.f32.xlu1 %v652_v59  ;;  %118 = vadd.xlane.f32.xlu0 %v658_v62  ;;  %v662_v1 = vpop.xlane.xlu0 %54  ;;  %v664_v2 = vpop.xlane.xlu1 %56 }
  0xac   :  { %v666_v3 = vpop.eup %432  ;;  %442 = vpow2.f32 %v98_v63  ;;  %v72_v4 = vsub.f32 %v586_v14, %v662_v1  ;;  %v73_v5 = vsub.f32 %v591_v15, %v664_v2 }
  0xad   :  { %444 = vpow2.f32 %v100_v0 }
  0xae   :  { %v672_v6 = vpop.eup %434  ;;  %v102_v7 = vmul.f32 1.442695, %v72_v4  ;;  %v104_v8 = vmul.f32 1.442695, %v73_v5 }
  0xaf   :  { %120 = vadd.xlane.f32.xlu1 %v666_v3  ;;  %122 = vadd.xlane.f32.xlu0 %v672_v6  ;;  %v676_v9 = vpop.eup %436 }
  0xb0   :  { %446 = vpow2.f32 %v102_v7 }
  0xb1   :  { %448 = vpow2.f32 %v104_v8 }
  0xb2   :  { %v678_v10 = vpop.eup %438 }
  0xb3   :  { %124 = vadd.xlane.f32.xlu1 %v676_v9  ;;  %126 = vadd.xlane.f32.xlu0 %v678_v10  ;;  %v682_v11 = vpop.eup %440 }
  0xb6   :  { %v684_v12 = vpop.eup %442 }
  0xb7   :  { %128 = vadd.xlane.f32.xlu1 %v682_v11  ;;  %130 = vadd.xlane.f32.xlu0 %v684_v12  ;;  %v688_v13 = vpop.eup %444 }
  0xba   :  { %v690_v14 = vpop.eup %446 }
  0xbb   :  { %132 = vadd.xlane.f32.xlu1 %v688_v13  ;;  %134 = vadd.xlane.f32.xlu0 %v690_v14  ;;  %v694_v15 = vpop.eup %448 }
  0xbf   :  { %136 = vadd.xlane.f32.xlu1 %v694_v15 }
 0x12c   :  { %v107_v18 = vpop.xlane.xlu0 %106 }
 0x12d   :  { %450 = vlog2.f32 %v107_v18 }
 0x12e   :  { %452 = vrcp.f32 %v107_v18 }
 0x130   :  { %v109_v19 = vpop.xlane.xlu1 %108  ;;  %v111_v20 = vpop.xlane.xlu0 %110 }
 0x131   :  { %454 = vrcp.f32 %v109_v19 }
 0x132   :  { %456 = vlog2.f32 %v109_v19 }
 0x133   :  { %458 = vrcp.f32 %v111_v20 }
 0x134   :  { %460 = vlog2.f32 %v111_v20  ;;  %v113_v21 = vpop.xlane.xlu1 %112  ;;  %v115_v24 = vpop.xlane.xlu0 %114 }
 0x135   :  { %462 = vrcp.f32 %v113_v21 }
 0x136   :  { %464 = vlog2.f32 %v113_v21 }
 0x137   :  { %466 = vrcp.f32 %v115_v24  ;;  %v451_v25 = vpop.eup %450 }
 0x138   :  { %468 = vlog2.f32 %v115_v24  ;;  %v117_v26 = vpop.xlane.xlu1 %116  ;;  %v119_v27 = vpop.xlane.xlu0 %118  ;;  %v267_v31 = vmul.f32 0.6931472, %v451_v25 }
 0x139   :  { %v453_v30 = vpop.eup %452  ;;  %470 = vrcp.f32 %v117_v26 }
 0x13a   :  { %472 = vlog2.f32 %v117_v26  ;;  %v298_v33 = vadd.f32 %v267_v31, %v595_v16  ;;  %v170_v37 = vmul.f32 %v453_v30, %v619_v38 }
 0x13b   :  { %v455_v32 = vpop.eup %454  ;;  %474 = vrcp.f32 %v119_v27 }
 0x13c   :  { %v457_v36 = vpop.eup %456  ;;  %v171_v39 = vmul.f32 %v455_v32, %v630_v46  ;;  %476 = vlog2.f32 %v119_v27  ;;  %v121_v40 = vpop.xlane.xlu1 %120  ;;  %315 = vst.msk [vmem:[%s818_s2] sm:$0xff] %vm314_vm0, %v298_v33 }
 0x13d   :  { %v123_v44 = vpop.xlane.xlu0 %122  ;;  %v459_v45 = vpop.eup %458  ;;  %v269_v47 = vmul.f32 0.6931472, %v457_v36  ;;  %478 = vrcp.f32 %v121_v40 }
 0x13e   :  { %v461_v48 = vpop.eup %460  ;;  %v374_v52 = vpack.c.bf16 %v171_v39, %v170_v37  ;;  %480 = vlog2.f32 %v121_v40  ;;  %v172_v55 = vmul.f32 %v459_v45, %v626_v43 }
 0x13f   :  { %v463_v16 = vpop.eup %462  ;;  %v299_v53 = vadd.f32 %v269_v47, %v601_v22  ;;  %v271_v38 = vmul.f32 0.6931472, %v461_v48  ;;  %482 = vrcp.f32 %v123_v44 }
 0x140   :  { %v465_v46 = vpop.eup %464  ;;  %375 = vst [vmem:[%s819_s1] sm:$0xff] %v374_v52   ;;  %v173_v56 = vmul.f32 %v463_v16, %v638_v51  ;;  %484 = vlog2.f32 %v123_v44  ;;  %v125_v60 = vpop.xlane.xlu1 %124 }
 0x141   :  { %v127_v61 = vpop.xlane.xlu0 %126  ;;  %v467_v63 = vpop.eup %466  ;;  %316 = vst.msk [vmem:[%s818_s2 + $0x8] sm:$0xff] %vm314_vm0, %v299_v53  ;;  %v300_v22 = vadd.f32 %v271_v38, %v597_v17  ;;  %v273_v0 = vmul.f32 0.6931472, %v465_v46  ;;  %486 = vrcp.f32 %v125_v60 }
 0x142   :  { %v469_v4 = vpop.eup %468  ;;  %v379_v5 = vpack.c.bf16 %v173_v56, %v172_v55  ;;  %488 = vlog2.f32 %v125_v60  ;;  %v174_v17 = vmul.f32 %v467_v63, %v644_v54 }
 0x143   :  { %v471_v7 = vpop.eup %470  ;;  %317 = vst.msk [vmem:[%s818_s2 + $0x10] sm:$0xff] %vm314_vm0, %v300_v22  ;;  %v301_v43 = vadd.f32 %v273_v0, %v603_v23  ;;  %v275_v51 = vmul.f32 0.6931472, %v469_v4  ;;  %490 = vrcp.f32 %v127_v61 }
 0x144   :  { %v473_v8 = vpop.eup %472  ;;  %411 = vst [vmem:[%s819_s1 + $0x8] sm:$0xff] %v379_v5   ;;  %v175_v18 = vmul.f32 %v471_v7, %v652_v59  ;;  %492 = vlog2.f32 %v127_v61  ;;  %v129_v19 = vpop.xlane.xlu1 %128 }
 0x145   :  { %v131_v20 = vpop.xlane.xlu0 %130  ;;  %v475_v21 = vpop.eup %474  ;;  %318 = vst.msk [vmem:[%s818_s2 + $0x18] sm:$0xff] %vm314_vm0, %v301_v43  ;;  %v302_v23 = vadd.f32 %v275_v51, %v607_v28  ;;  %v277_v24 = vmul.f32 0.6931472, %v473_v8  ;;  %494 = vrcp.f32 %v129_v19 }
 0x146   :  { %v477_v25 = vpop.eup %476  ;;  %v384_v26 = vpack.c.bf16 %v175_v18, %v174_v17  ;;  %496 = vlog2.f32 %v129_v19  ;;  %v176_v28 = vmul.f32 %v475_v21, %v658_v62 }
 0x147   :  { %v479_v27 = vpop.eup %478  ;;  %319 = vst.msk [vmem:[%s818_s2 + $0x20] sm:$0xff] %vm314_vm0, %v302_v23  ;;  %v303_v54 = vadd.f32 %v277_v24, %v609_v29  ;;  %v279_v59 = vmul.f32 0.6931472, %v477_v25  ;;  %498 = vrcp.f32 %v131_v20 }
 0x148   :  { %v481_v30 = vpop.eup %480  ;;  %412 = vst [vmem:[%s819_s1 + $0x10] sm:$0xff] %v384_v26   ;;  %v177_v31 = vmul.f32 %v479_v27, %v666_v3  ;;  %500 = vlog2.f32 %v131_v20  ;;  %v133_v32 = vpop.xlane.xlu1 %132 }
 0x149   :  { %v135_v33 = vpop.xlane.xlu0 %134  ;;  %v483_v36 = vpop.eup %482  ;;  %320 = vst.msk [vmem:[%s818_s2 + $0x28] sm:$0xff] %vm314_vm0, %v303_v54  ;;  %v304_v29 = vadd.f32 %v279_v59, %v613_v34  ;;  %v281_v37 = vmul.f32 0.6931472, %v481_v30  ;;  %502 = vrcp.f32 %v133_v32 }
 0x14a   :  { %v485_v39 = vpop.eup %484  ;;  %v389_v40 = vpack.c.bf16 %v177_v31, %v176_v28  ;;  %504 = vlog2.f32 %v133_v32  ;;  %v178_v34 = vmul.f32 %v483_v36, %v672_v6 }
 0x14b   :  { %v487_v44 = vpop.eup %486  ;;  %321 = vst.msk [vmem:[%s818_s2 + $0x30] sm:$0xff] %vm314_vm0, %v304_v29  ;;  %v305_v62 = vadd.f32 %v281_v37, %v615_v35  ;;  %v283_v3 = vmul.f32 0.6931472, %v485_v39  ;;  %506 = vrcp.f32 %v135_v33 }
 0x14c   :  { %v489_v45 = vpop.eup %488  ;;  %413 = vst [vmem:[%s819_s1 + $0x18] sm:$0xff] %v389_v40   ;;  %v179_v47 = vmul.f32 %v487_v44, %v676_v9  ;;  %508 = vlog2.f32 %v135_v33  ;;  %v137_v48 = vpop.xlane.xlu1 %136 }
 0x14d   :  { %v491_v52 = vpop.eup %490  ;;  %322 = vst.msk [vmem:[%s818_s2 + $0x38] sm:$0xff] %vm314_vm0, %v305_v62  ;;  %v306_v35 = vadd.f32 %v283_v3, %v622_v41  ;;  %v285_v16 = vmul.f32 0.6931472, %v489_v45  ;;  %510 = vrcp.f32 %v137_v48 }
 0x14e   :  { %v493_v53 = vpop.eup %492  ;;  %v394_v38 = vpack.c.bf16 %v179_v47, %v178_v34  ;;  %512 = vlog2.f32 %v137_v48  ;;  %v180_v41 = vmul.f32 %v491_v52, %v678_v10 }
 0x14f   :  { %v495_v46 = vpop.eup %494  ;;  %323 = vst.msk [vmem:[%s818_s2 + $0x40] sm:$0xff] %vm314_vm0, %v306_v35  ;;  %v307_v6 = vadd.f32 %v285_v16, %v624_v42  ;;  %v287_v9 = vmul.f32 0.6931472, %v493_v53 }
 0x150   :  { %v497_v55 = vpop.eup %496  ;;  %414 = vst [vmem:[%s819_s1 + $0x20] sm:$0xff] %v394_v38   ;;  %v181_v56 = vmul.f32 %v495_v46, %v682_v11 }
 0x151   :  { %v499_v60 = vpop.eup %498  ;;  %324 = vst.msk [vmem:[%s818_s2 + $0x48] sm:$0xff] %vm314_vm0, %v307_v6  ;;  %v308_v61 = vadd.f32 %v287_v9, %v634_v49  ;;  %v289_v63 = vmul.f32 0.6931472, %v497_v55 }
 0x152   :  { %v501_v42 = vpop.eup %500  ;;  %v399_v22 = vpack.c.bf16 %v181_v56, %v180_v41  ;;  %v182_v5 = vmul.f32 %v499_v60, %v684_v12 }
 0x153   :  { %v503_v0 = vpop.eup %502  ;;  %325 = vst.msk [vmem:[%s818_s2 + $0x50] sm:$0xff] %vm314_vm0, %v308_v61  ;;  %v309_v10 = vadd.f32 %v289_v63, %v636_v50  ;;  %v291_v11 = vmul.f32 0.6931472, %v501_v42 }
 0x154   :  { %v505_v4 = vpop.eup %504  ;;  %415 = vst [vmem:[%s819_s1 + $0x28] sm:$0xff] %v399_v22   ;;  %v183_v49 = vmul.f32 %v503_v0, %v688_v13 }
 0x155   :  { %v507_v7 = vpop.eup %506  ;;  %326 = vst.msk [vmem:[%s818_s2 + $0x58] sm:$0xff] %vm314_vm0, %v309_v10  ;;  %v310_v43 = vadd.f32 %v291_v11, %v648_v57  ;;  %v293_v51 = vmul.f32 0.6931472, %v505_v4 }
 0x156   :  { %v509_v50 = vpop.eup %508  ;;  %v404_v8 = vpack.c.bf16 %v183_v49, %v182_v5  ;;  %v184_v19 = vmul.f32 %v507_v7, %v690_v14 }
 0x157   :  { %v511_v17 = vpop.eup %510  ;;  %327 = vst.msk [vmem:[%s818_s2 + $0x60] sm:$0xff] %vm314_vm0, %v310_v43  ;;  %v311_v12 = vadd.f32 %v293_v51, %v650_v58  ;;  %v295_v13 = vmul.f32 0.6931472, %v509_v50 }
 0x158   :  { %v513_v18 = vpop.eup %512  ;;  %416 = vst [vmem:[%s819_s1 + $0x30] sm:$0xff] %v404_v8   ;;  %v185_v57 = vmul.f32 %v511_v17, %v694_v15 }
 0x159   :  { %328 = vst.msk [vmem:[%s818_s2 + $0x68] sm:$0xff] %vm314_vm0, %v311_v12  ;;  %v312_v20 = vadd.f32 %v295_v13, %v662_v1  ;;  %v297_v21 = vmul.f32 0.6931472, %v513_v18 }
 0x15a   :  { %v409_v23 = vpack.c.bf16 %v185_v57, %v184_v19 }
 0x15b   :  { %329 = vst.msk [vmem:[%s818_s2 + $0x70] sm:$0xff] %vm314_vm0, %v312_v20  ;;  %v313_v58 = vadd.f32 %v297_v21, %v664_v2 }
 0x15c   :  { %417 = vst [vmem:[%s819_s1 + $0x38] sm:$0xff] %v409_v23  }
 0x15d   :  { %330 = vst.msk [vmem:[%s818_s2 + $0x78] sm:$0xff] %vm314_vm0, %v313_v58 }

// kernel: _refine_labels_impl.3
= control target key start
LH: loop header
LB: loop body
LE: loop exit
PB: predicated region body
PF: predicated region fallthrough
CT: control target
= control target key end

     0   :  { %v969_v0 = vmov 0   ;;  %s1541_s5 = inlined_call_operand.vmem [shape: f32[128,1], index: 5, kind: input, shape index: {}]   ;;  %s1542_s2 = inlined_call_operand.vmem [shape: bf16[128,128], index: 2, kind: input, shape index: {}]   ;;  %s1543_s1 = inlined_call_operand.vmem [shape: bf16[128,128], index: 1, kind: input, shape index: {}]   ;;  %s1544_s6 = inlined_call_operand.vmem [shape: s32[128,1], index: 6, kind: input, shape index: {}]   ;;  %s1545_s4 = inlined_call_operand.vmem [shape: f32[128,1], index: 4, kind: input, shape index: {}]   ;;  %s1546_s0 = inlined_call_operand.<no memory space> [shape: f32[1], index: 0, kind: input, shape index: {}]   ;;  %s1547_s3 = inlined_call_operand.vmem [shape: f32[128,128], index: 3, kind: input, shape index: {}]   ;;  %s1548_s7 = inlined_call_operand.vmem [shape: f32[128,128], index: 7, kind: output, shape index: {0}]   ;;  %s1549_s8 = inlined_call_operand.vmem [shape: f32[128,1], index: 8, kind: output, shape index: {1}]  }
   0x1   :  { %952 = vset.pattern.permute.xlu1 %v969_v0  ;;  %951 = vset.pattern.permute.xlu0 %v969_v0  ;;  %v345_v1 = vld [vmem:[%s1541_s5 + $0x10] sm:$0xff]  ;;  %v343_v2 = vld [vmem:[%s1541_s5] sm:$0xff]  ;;  %v346_v4 = vld [vmem:[%s1541_s5 + $0x18] sm:$0xff]  ;;  %s586_s15 = ssub.f32 1.0, %s1546_s0 }
   0x2   :  { %371 = vperm.xlu1 %952, %v345_v1   ;;  %361 = vperm.xlu0 %951, %v343_v2   ;;  %v953_v3 = vld [vmem:[%s1542_s2] sm:$0xff]   ;;  %v344_v5 = vld [vmem:[%s1541_s5 + $0x8] sm:$0xff]  ;;  %v955_v9 = vld [vmem:[%s1542_s2 + $0x10] sm:$0xff]  }
   0x3   :  { %901 = vmatprep.subr.bf16.mxu0 %v953_v3  ;;  %933 = vmatprep.subr.bf16.mxu1 %v953_v3  ;;  %v954_v6 = vld [vmem:[%s1542_s2 + $0x8] sm:$0xff]   ;;  %v347_v8 = vld [vmem:[%s1541_s5 + $0x20] sm:$0xff]  ;;  %v350_v10 = vld [vmem:[%s1541_s5 + $0x38] sm:$0xff] }
   0x4   :  { %902 = vmatpush3.bf16.msra.mxu0 %v953_v3  ;;  %941 = vmatpush3.bf16.msra.mxu1 %v953_v3  ;;  %v348_v7 = vld [vmem:[%s1541_s5 + $0x28] sm:$0xff]  ;;  %v349_v11 = vld [vmem:[%s1541_s5 + $0x30] sm:$0xff]  ;;  %v956_v12 = vld [vmem:[%s1542_s2 + $0x18] sm:$0xff]  }
   0x5   :  { %903 = vmatprep.subr.bf16.mxu0 %v954_v6  ;;  %934 = vmatprep.subr.bf16.mxu1 %v954_v6  ;;  %v352_v13 = vld [vmem:[%s1541_s5 + $0x48] sm:$0xff]  ;;  %v351_v14 = vld [vmem:[%s1541_s5 + $0x40] sm:$0xff]  ;;  %v354_v18 = vld [vmem:[%s1541_s5 + $0x58] sm:$0xff] }
   0x6   :  { %376 = vperm.xlu1 %952, %v346_v4   ;;  %366 = vperm.xlu0 %951, %v344_v5   ;;  %v957_v15 = vld [vmem:[%s1542_s2 + $0x20] sm:$0xff]   ;;  %v353_v19 = vld [vmem:[%s1541_s5 + $0x50] sm:$0xff]  ;;  %v958_v20 = vld [vmem:[%s1542_s2 + $0x28] sm:$0xff]  }
   0x7   :  { %v961_v16 = vld [vmem:[%s1543_s1] sm:$0xff]   ;;  %v356_v21 = vld [vmem:[%s1541_s5 + $0x68] sm:$0xff]  ;;  %v959_v23 = vld [vmem:[%s1542_s2 + $0x30] sm:$0xff]  }
   0x8   :  { %904 = vmatpush3.bf16.msra.mxu0 %v954_v6  ;;  %942 = vmatpush3.bf16.msra.mxu1 %v954_v6  ;;  %v962_v17 = vld [vmem:[%s1543_s1 + $0x20] sm:$0xff]   ;;  %v358_v24 = vld [vmem:[%s1541_s5 + $0x78] sm:$0xff]  ;;  %v357_v25 = vld [vmem:[%s1541_s5 + $0x70] sm:$0xff] }
   0x9   :  { %905 = vmatprep.subr.bf16.mxu0 %v955_v9  ;;  %935 = vmatprep.subr.bf16.mxu1 %v955_v9  ;;  %v355_v22 = vld [vmem:[%s1541_s5 + $0x60] sm:$0xff]  ;;  %v960_v26 = vld [vmem:[%s1542_s2 + $0x38] sm:$0xff]   ;;  %v458_v27 = vld [vmem:[%s1544_s6 + $0x8] sm:$0xff] }
   0xa   :  { %386 = vperm.xlu1 %952, %v348_v7   ;;  %381 = vperm.xlu0 %951, %v347_v8   ;;  %v457_v28 = vld [vmem:[%s1544_s6] sm:$0xff]  ;;  %v963_v29 = vld [vmem:[%s1543_s1 + $0x8] sm:$0xff]   ;;  %v965_v31 = vld [vmem:[%s1543_s1 + $0x10] sm:$0xff]  }
   0xb   :  { %917 = vmatprep.mubr.bf16.mxu0 %v961_v16  ;;  %925 = vmatprep.mubr.bf16.mxu1 %v962_v17  ;;  %v964_v30 = vld [vmem:[%s1543_s1 + $0x28] sm:$0xff]   ;;  %v966_v32 = vld [vmem:[%s1543_s1 + $0x30] sm:$0xff]   ;;  %v460_v33 = vld [vmem:[%s1544_s6 + $0x18] sm:$0xff] }
   0xc   :  { %906 = vmatpush3.bf16.msra.mxu0 %v955_v9  ;;  %943 = vmatpush3.bf16.msra.mxu1 %v955_v9  ;;  %v459_v34 = vld [vmem:[%s1544_s6 + $0x10] sm:$0xff]  ;;  %v462_v35 = vld [vmem:[%s1544_s6 + $0x28] sm:$0xff]  ;;  %v461_v36 = vld [vmem:[%s1544_s6 + $0x20] sm:$0xff] }
   0xd   :  { %907 = vmatprep.subr.bf16.mxu0 %v956_v12  ;;  %936 = vmatprep.subr.bf16.mxu1 %v956_v12  ;;  %v967_v37 = vld [vmem:[%s1543_s1 + $0x18] sm:$0xff]   ;;  %v463_v40 = vld [vmem:[%s1544_s6 + $0x30] sm:$0xff]  ;;  %v466_v41 = vld [vmem:[%s1544_s6 + $0x48] sm:$0xff] }
   0xe   :  { %396 = vperm.xlu1 %952, %v350_v10   ;;  %391 = vperm.xlu0 %951, %v349_v11   ;;  %v968_v38 = vld [vmem:[%s1543_s1 + $0x38] sm:$0xff]   ;;  %v465_v42 = vld [vmem:[%s1544_s6 + $0x40] sm:$0xff]  ;;  %v467_v44 = vld [vmem:[%s1544_s6 + $0x50] sm:$0xff] }
   0xf   :  { %v464_v39 = vld [vmem:[%s1544_s6 + $0x38] sm:$0xff]  ;;  %v470_v45 = vld [vmem:[%s1544_s6 + $0x68] sm:$0xff]  ;;  %v469_v46 = vld [vmem:[%s1544_s6 + $0x60] sm:$0xff] }
  0x10   :  { %908 = vmatpush3.bf16.msra.mxu0 %v956_v12  ;;  %944 = vmatpush3.bf16.msra.mxu1 %v956_v12  ;;  %v468_v43 = vld [vmem:[%s1544_s6 + $0x58] sm:$0xff]  ;;  %v471_v48 = vld [vmem:[%s1544_s6 + $0x70] sm:$0xff]  ;;  %v653_v49 = vld [vmem:[%s1545_s4 + $0x8] sm:$0xff] }
  0x11   :  { %909 = vmatprep.subr.bf16.mxu0 %v957_v15  ;;  %937 = vmatprep.subr.bf16.mxu1 %v957_v15  ;;  %v472_v47 = vld [vmem:[%s1544_s6 + $0x78] sm:$0xff]  ;;  %v652_v50 = vld [vmem:[%s1545_s4] sm:$0xff]  ;;  %v654_v52 = vld [vmem:[%s1545_s4 + $0x10] sm:$0xff] }
  0x12   :  { %406 = vperm.xlu1 %952, %v352_v13   ;;  %401 = vperm.xlu0 %951, %v351_v14   ;;  %v655_v51 = vld [vmem:[%s1545_s4 + $0x18] sm:$0xff]  ;;  %v657_v53 = vld [vmem:[%s1545_s4 + $0x28] sm:$0xff]  ;;  %v656_v54 = vld [vmem:[%s1545_s4 + $0x20] sm:$0xff] }
  0x13   :  { %v659_v55 = vld [vmem:[%s1545_s4 + $0x38] sm:$0xff]  ;;  %v658_v56 = vld [vmem:[%s1545_s4 + $0x30] sm:$0xff]  ;;  %v661_v57 = vld [vmem:[%s1545_s4 + $0x48] sm:$0xff] }
  0x14   :  { %910 = vmatpush3.bf16.msra.mxu0 %v957_v15  ;;  %945 = vmatpush3.bf16.msra.mxu1 %v957_v15  ;;  %v660_v58 = vld [vmem:[%s1545_s4 + $0x40] sm:$0xff]  ;;  %v663_v59 = vld [vmem:[%s1545_s4 + $0x58] sm:$0xff]  ;;  %v662_v60 = vld [vmem:[%s1545_s4 + $0x50] sm:$0xff] }
  0x15   :  { %911 = vmatprep.subr.bf16.mxu0 %v958_v20  ;;  %938 = vmatprep.subr.bf16.mxu1 %v958_v20  ;;  %v665_v61 = vld [vmem:[%s1545_s4 + $0x68] sm:$0xff]  ;;  %v664_v62 = vld [vmem:[%s1545_s4 + $0x60] sm:$0xff]  ;;  %v667_v63 = vld [vmem:[%s1545_s4 + $0x78] sm:$0xff] }
  0x16   :  { %416 = vperm.xlu1 %952, %v354_v18   ;;  %411 = vperm.xlu0 %951, %v353_v19   ;;  %v666_v0 = vld [vmem:[%s1545_s4 + $0x70] sm:$0xff] }
  0x18   :  { %912 = vmatpush3.bf16.msra.mxu0 %v958_v20  ;;  %946 = vmatpush3.bf16.msra.mxu1 %v958_v20 }
  0x19   :  { %913 = vmatprep.subr.bf16.mxu0 %v959_v23  ;;  %939 = vmatprep.subr.bf16.mxu1 %v959_v23 }
  0x1a   :  { %426 = vperm.xlu1 %952, %v356_v21   ;;  %421 = vperm.xlu0 %951, %v355_v22  }
  0x1c   :  { %914 = vmatpush3.bf16.msra.mxu0 %v959_v23  ;;  %947 = vmatpush3.bf16.msra.mxu1 %v959_v23 }
  0x1d   :  { %915 = vmatprep.subr.bf16.mxu0 %v960_v26  ;;  %940 = vmatprep.subr.bf16.mxu1 %v960_v26 }
  0x1e   :  { %436 = vperm.xlu1 %952, %v358_v24   ;;  %431 = vperm.xlu0 %951, %v357_v25  }
  0x20   :  { %916 = vmatpush3.bf16.msra.mxu0 %v960_v26  ;;  %948 = vmatpush3.bf16.msra.mxu1 %v960_v26 }
  0x22   :  { %477 = vperm.xlu1 %952, %v458_v27   ;;  %474 = vperm.xlu0 %951, %v457_v28  }
  0x23   :  { %918 = vmatmul.mubr.bf16.vlgmr.msra.gmra.mrb[0].mxu0 %v963_v29  ;;  %926 = vmatmul.mubr.bf16.vlgmr.msra.gmra.mrb[0].mxu1 %v964_v30 }
  0x24   :  { %921 = vmatprep.mubr.bf16.mxu0 %v965_v31  ;;  %929 = vmatprep.mubr.bf16.mxu1 %v966_v32 }
  0x26   :  { %483 = vperm.xlu1 %952, %v460_v33   ;;  %480 = vperm.xlu0 %951, %v459_v34  }
  0x2a   :  { %489 = vperm.xlu1 %952, %v462_v35   ;;  %486 = vperm.xlu0 %951, %v461_v36   ;;  %v455_v35 = vlaneseq }
  0x2b   :  { %922 = vmatmul.mubr.bf16.gmra.mrb[4].mxu0 %v967_v37  ;;  %930 = vmatmul.mubr.bf16.gmra.mrb[4].mxu1 %v968_v38 }
  0x2c   :  { %v456_v36 = vand.u32 127, %v455_v35  ;;  %v646_v35 = vld [vmem:[%s1547_s3 + $0x50] sm:$0xff] }
  0x2e   :  { %495 = vperm.xlu1 %952, %v464_v39   ;;  %492 = vperm.xlu0 %951, %v463_v40   ;;  %v970_v39 = vmov 0.0  }
  0x32   :  { %501 = vperm.xlu1 %952, %v466_v41   ;;  %498 = vperm.xlu0 %951, %v465_v42  }
  0x36   :  { %507 = vperm.xlu1 %952, %v468_v43   ;;  %504 = vperm.xlu0 %951, %v467_v44   ;;  %v569_v43 = vstv %s1546_s0 }
  0x3a   :  { %513 = vperm.xlu1 %952, %v470_v45   ;;  %510 = vperm.xlu0 %951, %v469_v46  }
  0x3e   :  { %519 = vperm.xlu1 %952, %v472_v47   ;;  %516 = vperm.xlu0 %951, %v471_v48   ;;  %v1260_v48 = vstv %s586_s15 }
  0x42   :  { %675 = vperm.xlu1 %952, %v653_v49   ;;  %670 = vperm.xlu0 %951, %v652_v50  }
  0x46   :  { %685 = vperm.xlu1 %952, %v655_v51   ;;  %680 = vperm.xlu0 %951, %v654_v52  }
  0x4a   :  { %695 = vperm.xlu1 %952, %v657_v53   ;;  %690 = vperm.xlu0 %951, %v656_v54  }
  0x4e   :  { %705 = vperm.xlu1 %952, %v659_v55   ;;  %700 = vperm.xlu0 %951, %v658_v56  }
  0x52   :  { %715 = vperm.xlu1 %952, %v661_v57   ;;  %710 = vperm.xlu0 %951, %v660_v58  }
  0x56   :  { %725 = vperm.xlu1 %952, %v663_v59   ;;  %720 = vperm.xlu0 %951, %v662_v60  }
  0x5a   :  { %735 = vperm.xlu1 %952, %v665_v61   ;;  %730 = vperm.xlu0 %951, %v664_v62  }
  0x5e   :  { %745 = vperm.xlu1 %952, %v667_v63   ;;  %740 = vperm.xlu0 %951, %v666_v0  }
  0x81   :  { %v1208_v1 = vpop.permute.xlu0 %361  ;;  %v1210_v2 = vpop.permute.xlu1 %371 }
  0x85   :  { %v1212_v3 = vpop.permute.xlu0 %366  ;;  %v1216_v5 = vpop.permute.xlu1 %376 }
  0x89   :  { %v1214_v4 = vpop.permute.xlu0 %381  ;;  %v1220_v7 = vpop.permute.xlu1 %386 }
  0x8d   :  { %v1218_v6 = vpop.permute.xlu0 %391  ;;  %v1224_v9 = vpop.permute.xlu1 %396 }
  0x91   :  { %v1222_v8 = vpop.permute.xlu0 %401  ;;  %v1228_v11 = vpop.permute.xlu1 %406 }
  0x95   :  { %v1226_v10 = vpop.permute.xlu0 %411  ;;  %v1232_v13 = vpop.permute.xlu1 %416 }
  0x99   :  { %v1230_v12 = vpop.permute.xlu0 %421  ;;  %v1236_v15 = vpop.permute.xlu1 %426 }
  0x9d   :  { %v1234_v14 = vpop.permute.xlu0 %431  ;;  %v1238_v17 = vpop.permute.xlu1 %436 }
  0xa1   :  { %v475_v16 = vpop.permute.xlu0 %474  ;;  %v478_v19 = vpop.permute.xlu1 %477 }
  0xa2   :  { %vm522_vm0 = vcmp.eq.s32.totalorder %v456_v36, %v478_v19  ;;  %vm521_vm1 = vcmp.eq.s32.totalorder %v456_v36, %v475_v16  ;;  %v1277_v19 = vld [vmem:[%s1547_s3 + $0x8] sm:$0xff] }
  0xa3   :  { %v870_v40 = vsel %vm522_vm0, 1.0, %v970_v39  ;;  %v869_v44 = vsel %vm521_vm1, 1.0, %v970_v39  ;;  %vm828_vm0 = vcmask 7168  }
  0xa4   :  { %v1258_v47 = vmul.f32 %v870_v40, %v569_v43  ;;  %v1262_v49 = vmul.f32 %v869_v44, %v569_v43 }
  0xa5   :  { %v481_v18 = vpop.permute.xlu0 %480  ;;  %v484_v21 = vpop.permute.xlu1 %483 }
  0xa6   :  { %vm524_vm2 = vcmp.eq.s32.totalorder %v456_v36, %v484_v21  ;;  %vm523_vm3 = vcmp.eq.s32.totalorder %v456_v36, %v481_v18 }
  0xa7   :  { %v872_v45 = vsel %vm524_vm2, 1.0, %v970_v39  ;;  %v871_v46 = vsel %vm523_vm3, 1.0, %v970_v39 }
  0xa8   :  { %v1264_v50 = vmul.f32 %v872_v45, %v569_v43  ;;  %v1266_v51 = vmul.f32 %v871_v46, %v569_v43 }
  0xa9   :  { %v487_v20 = vpop.permute.xlu0 %486  ;;  %v490_v23 = vpop.permute.xlu1 %489 }
  0xaa   :  { %vm526_vm4 = vcmp.eq.s32.totalorder %v456_v36, %v490_v23  ;;  %vm525_vm5 = vcmp.eq.s32.totalorder %v456_v36, %v487_v20 }
  0xab   :  { %v874_v54 = vsel %vm526_vm4, 1.0, %v970_v39  ;;  %v873_v55 = vsel %vm525_vm5, 1.0, %v970_v39 }
  0xac   :  { %v1272_v63 = vmul.f32 %v874_v54, %v569_v43  ;;  %v1279_v20 = vmul.f32 %v873_v55, %v569_v43 }
  0xad   :  { %v493_v22 = vpop.permute.xlu0 %492  ;;  %v496_v25 = vpop.permute.xlu1 %495 }
  0xae   :  { %vm528_vm6 = vcmp.eq.s32.totalorder %v456_v36, %v496_v25  ;;  %vm527_vm7 = vcmp.eq.s32.totalorder %v456_v36, %v493_v22  ;;  %v1293_v25 = vld [vmem:[%s1547_s3 + $0x10] sm:$0xff] }
  0xaf   :  { %v876_v56 = vsel %vm528_vm6, 1.0, %v970_v39  ;;  %v875_v57 = vsel %vm527_vm7, 1.0, %v970_v39 }
  0xb0   :  { %v1281_v21 = vmul.f32 %v876_v56, %v569_v43  ;;  %v1283_v22 = vmul.f32 %v875_v57, %v569_v43 }
  0xb1   :  { %v499_v24 = vpop.permute.xlu0 %498  ;;  %v502_v27 = vpop.permute.xlu1 %501 }
  0xb2   :  { %vm530_vm8 = vcmp.eq.s32.totalorder %v456_v36, %v502_v27  ;;  %vm529_vm9 = vcmp.eq.s32.totalorder %v456_v36, %v499_v24  ;;  %v1288_v24 = vld [vmem:[%s1547_s3] sm:$0xff] }
  0xb3   :  { %v878_v58 = vsel %vm530_vm8, 1.0, %v970_v39  ;;  %v877_v59 = vsel %vm529_vm9, 1.0, %v970_v39 }
  0xb4   :  { %v579_v23 = vmul.f32 %v878_v58, %v569_v43 }
  0xb5   :  { %v505_v26 = vpop.permute.xlu0 %504  ;;  %v508_v29 = vpop.permute.xlu1 %507 }
  0xb6   :  { %vm532_vm10 = vcmp.eq.s32.totalorder %v456_v36, %v508_v29  ;;  %vm531_vm11 = vcmp.eq.s32.totalorder %v456_v36, %v505_v26  ;;  %v578_v26 = vmul.f32 %v877_v59, %v569_v43 }
  0xb7   :  { %v880_v60 = vsel %vm532_vm10, 1.0, %v970_v39  ;;  %v879_v61 = vsel %vm531_vm11, 1.0, %v970_v39 }
  0xb8   :  { %v581_v27 = vmul.f32 %v880_v60, %v569_v43 }
  0xb9   :  { %v511_v28 = vpop.permute.xlu0 %510  ;;  %v514_v31 = vpop.permute.xlu1 %513 }
  0xba   :  { %vm534_vm12 = vcmp.eq.s32.totalorder %v456_v36, %v514_v31  ;;  %vm533_vm13 = vcmp.eq.s32.totalorder %v456_v36, %v511_v28  ;;  %v580_v28 = vmul.f32 %v879_v61, %v569_v43  ;;  %v1302_v31 = vld [vmem:[%s1547_s3 + $0x40] sm:$0xff] }
  0xbb   :  { %v882_v62 = vsel %vm534_vm12, 1.0, %v970_v39  ;;  %v881_v0 = vsel %vm533_vm13, 1.0, %v970_v39 }
  0xbc   :  { %v1295_v29 = vmul.f32 %v882_v62, %v569_v43 }
  0xbd   :  { %v517_v30 = vpop.permute.xlu0 %516  ;;  %v520_v33 = vpop.permute.xlu1 %519 }
  0xbe   :  { %vm536_vm14 = vcmp.eq.s32.totalorder %v456_v36, %v520_v33  ;;  %vm535_vm15 = vcmp.eq.s32.totalorder %v456_v36, %v517_v30  ;;  %v1307_v36 = vmul.f32 %v881_v0, %v569_v43 }
  0xbf   :  { %v884_v16 = vsel %vm536_vm14, 1.0, %v970_v39  ;;  %v883_v18 = vsel %vm535_vm15, 1.0, %v970_v39 }
  0xc0   :  { %v1309_v39 = vmul.f32 %v884_v16, %v569_v43  ;;  %v1311_v40 = vmul.f32 %v883_v18, %v569_v43 }
  0xc1   :  { %v1240_v32 = vpop.permute.xlu0 %670  ;;  %v1244_v37 = vpop.permute.xlu1 %675 }
  0xc2   :  { %v749_v44 = vsub.f32 %v1277_v19, %v1244_v37  ;;  %v748_v54 = vsub.f32 %v1288_v24, %v1240_v32  ;;  %v640_v37 = vld [vmem:[%s1547_s3 + $0x20] sm:$0xff] }
  0xc5   :  { %v1242_v34 = vpop.permute.xlu0 %680  ;;  %v1251_v41 = vpop.permute.xlu1 %685 }
  0xc6   :  { %v750_v55 = vsub.f32 %v1293_v25, %v1242_v34 }
  0xc9   :  { %v1246_v38 = vpop.permute.xlu0 %690  ;;  %v1268_v52 = vpop.permute.xlu1 %695 }
  0xcd   :  { %v1253_v42 = vpop.permute.xlu0 %700  ;;  %v1297_v30 = vpop.permute.xlu1 %705 }
  0xd1   :  { %v1270_v53 = vpop.permute.xlu0 %710 }
  0xd2   :  { %v756_v43 = vsub.f32 %v1302_v31, %v1270_v53 }
  0xd5   :  { %v721_v33 = vpop.permute.xlu0 %720 }
  0xd6   :  { %v758_v60 = vsub.f32 %v646_v35, %v721_v33 }
  0xf6   :  { %v919_v45 = vpop.f32.mrb[0].mxu0  ;;  %v927_v46 = vpop.f32.mrb[0].mxu1 }
  0xf7   :  { %v441_v56 = vmul.f32 %v919_v45, %v1210_v2  ;;  %v449_v57 = vmul.f32 %v927_v46, %v1226_v10  ;;  %v228_v58 = vpop.f32.mrb[1].mxu0  ;;  %v260_v59 = vpop.f32.mrb[1].mxu1 }
  0xf8   :  { %v439_v61 = vmul.f32 %v1208_v1, %v228_v58  ;;  %v447_v62 = vmul.f32 %v1222_v8, %v260_v59  ;;  %v920_v0 = vpop.f32.mrb[2].mxu0  ;;  %v928_v16 = vpop.f32.mrb[2].mxu1 }
  0xf9   :  { %v590_v32 = vmul.f32 %v1260_v48, %v441_v56  ;;  %v598_v34 = vmul.f32 %v1260_v48, %v449_v57  ;;  %v442_v2 = vmul.f32 %v920_v0, %v1216_v5  ;;  %v450_v10 = vmul.f32 %v928_v16, %v1232_v13  ;;  %v231_v18 = vpop.f32.mrb[3].mxu0  ;;  %v263_v24 = vpop.f32.mrb[3].mxu1 }
  0xfa   :  { %v588_v25 = vmul.f32 %v1260_v48, %v439_v61  ;;  %v596_v53 = vmul.f32 %v1260_v48, %v447_v62  ;;  %v440_v1 = vmul.f32 %v1212_v3, %v231_v18  ;;  %v448_v8 = vmul.f32 %v1228_v11, %v263_v24  ;;  %v1339_v57 = vpop.permute.xlu1 %715 }
  0xfb   :  { %v606_v31 = vadd.f32 %v590_v32, %v1266_v51  ;;  %v614_v33 = vadd.f32 %v598_v34, %v580_v28  ;;  %v591_v35 = vmul.f32 %v1260_v48, %v442_v2  ;;  %v599_v45 = vmul.f32 %v1260_v48, %v450_v10 }
  0xfc   :  { %v604_v5 = vadd.f32 %v588_v25, %v1262_v49  ;;  %v612_v13 = vadd.f32 %v596_v53, %v578_v26  ;;  %v589_v46 = vmul.f32 %v1260_v48, %v440_v1  ;;  %v597_v56 = vmul.f32 %v1260_v48, %v448_v8 }
  0xfd   :  { %622 = vst [vmem:[%s1548_s7 + $0x10] sm:$0xff] %v606_v31  ;;  %630 = vst [vmem:[%s1548_s7 + $0x50] sm:$0xff] %v614_v33  ;;  %v1348_v3 = vadd.f32 %v591_v35, %v1264_v50  ;;  %v1350_v11 = vadd.f32 %v599_v45, %v581_v27  ;;  %v774_v49 = vsub.f32 0.0, %v614_v33  ;;  %v766_v51 = vsub.f32 0.0, %v606_v31  ;;  %v642_v45 = vld [vmem:[%s1547_s3 + $0x30] sm:$0xff] }
  0xfe   :  { %620 = vst [vmem:[%s1548_s7] sm:$0xff] %v604_v5  ;;  %628 = vst [vmem:[%s1548_s7 + $0x40] sm:$0xff] %v612_v13  ;;  %v605_v26 = vadd.f32 %v589_v46, %v1258_v47  ;;  %v1359_v28 = vadd.f32 %v597_v56, %v579_v23  ;;  %v923_v58 = vpop.f32.mrb[4].mxu0  ;;  %v931_v59 = vpop.f32.mrb[4].mxu1  ;;  %v772_v50 = vsub.f32 0.0, %v612_v13  ;;  %v764_v61 = vsub.f32 0.0, %v604_v5 }
  0xff   :  { %623 = vst [vmem:[%s1548_s7 + $0x18] sm:$0xff] %v1348_v3  ;;  %631 = vst [vmem:[%s1548_s7 + $0x58] sm:$0xff] %v1350_v11  ;;  %v445_v27 = vmul.f32 %v923_v58, %v1218_v6  ;;  %v453_v47 = vmul.f32 %v931_v59, %v1234_v14  ;;  %v244_v23 = vpop.f32.mrb[5].mxu0  ;;  %v276_v62 = vpop.f32.mrb[5].mxu1  ;;  %v790_v0 = vmul.f32 %v774_v49, %v758_v60  ;;  %v775_v46 = vsub.f32 0.0, %v1350_v11  ;;  %v648_v59 = vld [vmem:[%s1547_s3 + $0x60] sm:$0xff] }
 0x100   :  { %v782_v16 = vmul.f32 %v766_v51, %v750_v55  ;;  %621 = vst [vmem:[%s1548_s7 + $0x8] sm:$0xff] %v605_v26  ;;  %629 = vst [vmem:[%s1548_s7 + $0x48] sm:$0xff] %v1359_v28  ;;  %v443_v32 = vmul.f32 %v1214_v4, %v244_v23  ;;  %v451_v34 = vmul.f32 %v1230_v12, %v276_v62  ;;  %v924_v6 = vpop.f32.mrb[6].mxu0  ;;  %v932_v2 = vpop.f32.mrb[6].mxu1  ;;  %v773_v58 = vsub.f32 0.0, %v1359_v28 }
 0x101   :  { %v788_v14 = vmul.f32 %v772_v50, %v756_v43  ;;  %v780_v10 = vmul.f32 %v764_v61, %v748_v54  ;;  %v594_v60 = vmul.f32 %v1260_v48, %v445_v27  ;;  %v602_v55 = vmul.f32 %v1260_v48, %v453_v47  ;;  %v247_v25 = vpop.f32.mrb[7].mxu0  ;;  %v279_v53 = vpop.f32.mrb[7].mxu1  ;;  %816 = vadd.xlane.f32.xlu1 %v790_v0  ;;  %v639_v54 = vld [vmem:[%s1547_s3 + $0x18] sm:$0xff]  ;;  %v641_v0 = vld [vmem:[%s1547_s3 + $0x28] sm:$0xff] }
 0x102   :  { %v446_v18 = vmul.f32 %v924_v6, %v1224_v9  ;;  %v454_v24 = vmul.f32 %v932_v2, %v1238_v17  ;;  %v592_v1 = vmul.f32 %v1260_v48, %v443_v32  ;;  %v600_v4 = vmul.f32 %v1260_v48, %v451_v34  ;;  %800 = vadd.xlane.f32.xlu0 %v782_v16  ;;  %v726_v5 = vpop.permute.xlu1 %725  ;;  %v731_v51 = vpop.permute.xlu0 %730  ;;  %v643_v50 = vld [vmem:[%s1547_s3 + $0x38] sm:$0xff] }
 0x103   :  { %v444_v12 = vmul.f32 %v1220_v7, %v247_v25  ;;  %v452_v43 = vmul.f32 %v1236_v15, %v279_v53  ;;  %v610_v9 = vadd.f32 %v594_v60, %v1283_v22  ;;  %v1393_v17 = vadd.f32 %v602_v55, %v1311_v40  ;;  %v651_v53 = vld [vmem:[%s1547_s3 + $0x78] sm:$0xff] }
 0x104   :  { %v595_v8 = vmul.f32 %v1260_v48, %v446_v18  ;;  %v603_v31 = vmul.f32 %v1260_v48, %v454_v24  ;;  %v608_v33 = vadd.f32 %v592_v1, %v1279_v20  ;;  %v616_v7 = vadd.f32 %v600_v4, %v1307_v36 }
 0x105   :  { %v593_v15 = vmul.f32 %v1260_v48, %v444_v12  ;;  %v601_v35 = vmul.f32 %v1260_v48, %v452_v43  ;;  %626 = vst [vmem:[%s1548_s7 + $0x30] sm:$0xff] %v610_v9  ;;  %634 = vst [vmem:[%s1548_s7 + $0x70] sm:$0xff] %v1393_v17  ;;  %812 = vadd.xlane.f32.xlu1 %v788_v14  ;;  %v765_v20 = vsub.f32 0.0, %v605_v26  ;;  %v767_v36 = vsub.f32 0.0, %v1348_v3 }
 0x106   :  { %v611_v22 = vadd.f32 %v595_v8, %v1281_v21  ;;  %v1410_v40 = vadd.f32 %v603_v31, %v1309_v39  ;;  %v751_v48 = vsub.f32 %v639_v54, %v1251_v41  ;;  %624 = vst [vmem:[%s1548_s7 + $0x20] sm:$0xff] %v608_v33  ;;  %632 = vst [vmem:[%s1548_s7 + $0x60] sm:$0xff] %v616_v7  ;;  %796 = vadd.xlane.f32.xlu0 %v780_v10  ;;  %v647_v41 = vld [vmem:[%s1547_s3 + $0x58] sm:$0xff]  ;;  %v741_v28 = vpop.permute.xlu0 %740  ;;  %v736_v2 = vpop.permute.xlu1 %735  ;;  %v649_v10 = vld [vmem:[%s1547_s3 + $0x68] sm:$0xff] }
 0x107   :  { %v609_v21 = vadd.f32 %v593_v15, %v1272_v63  ;;  %v617_v39 = vadd.f32 %v601_v35, %v1295_v29  ;;  %v781_v63 = vmul.f32 %v765_v20, %v749_v44  ;;  %v770_v29 = vsub.f32 0.0, %v610_v9  ;;  %v645_v44 = vld [vmem:[%s1547_s3 + $0x48] sm:$0xff] }
 0x108   :  { %627 = vst [vmem:[%s1548_s7 + $0x38] sm:$0xff] %v611_v22  ;;  %635 = vst [vmem:[%s1548_s7 + $0x78] sm:$0xff] %v1410_v40  ;;  %v783_v13 = vmul.f32 %v767_v36, %v751_v48  ;;  %v754_v56 = vsub.f32 %v642_v45, %v1253_v42  ;;  %v759_v19 = vsub.f32 %v647_v41, %v726_v5  ;;  %v768_v49 = vsub.f32 0.0, %v608_v33 }
 0x109   :  { %625 = vst [vmem:[%s1548_s7 + $0x28] sm:$0xff] %v609_v21  ;;  %633 = vst [vmem:[%s1548_s7 + $0x68] sm:$0xff] %v617_v39  ;;  %798 = vadd.xlane.f32.xlu1 %v781_v63  ;;  %v752_v11 = vsub.f32 %v640_v37, %v1246_v38  ;;  %v757_v42 = vsub.f32 %v645_v44, %v1339_v57  ;;  %v776_v27 = vsub.f32 0.0, %v616_v7  ;;  %v771_v23 = vsub.f32 0.0, %v611_v22  ;;  %v650_v57 = vld [vmem:[%s1547_s3 + $0x70] sm:$0xff] }
 0x10a   :  { %802 = vadd.xlane.f32.xlu0 %v783_v13  ;;  %v786_v3 = vmul.f32 %v770_v29, %v754_v56  ;;  %v791_v26 = vmul.f32 %v775_v46, %v759_v19  ;;  %v760_v62 = vsub.f32 %v648_v59, %v731_v51  ;;  %v755_v38 = vsub.f32 %v643_v50, %v1297_v30  ;;  %v746_v25 = vpop.permute.xlu1 %745 }
 0x10b   :  { %v784_v61 = vmul.f32 %v768_v49, %v752_v11  ;;  %v789_v47 = vmul.f32 %v773_v58, %v757_v42  ;;  %v778_v32 = vsub.f32 0.0, %v1393_v17  ;;  %v769_v6 = vsub.f32 0.0, %v609_v21 }
 0x10c   :  { %v792_v16 = vmul.f32 %v776_v27, %v760_v62  ;;  %v787_v34 = vmul.f32 %v771_v23, %v755_v38  ;;  %v762_v14 = vsub.f32 %v650_v57, %v741_v28  ;;  %v753_v30 = vsub.f32 %v641_v0, %v1268_v52 }
 0x10d   :  { %808 = vadd.xlane.f32.xlu1 %v786_v3  ;;  %v777_v18 = vsub.f32 0.0, %v617_v39  ;;  %v761_v24 = vsub.f32 %v649_v10, %v736_v2  ;;  %v779_v4 = vsub.f32 0.0, %v1410_v40  ;;  %v763_v52 = vsub.f32 %v651_v53, %v746_v25 }
 0x10e   :  { %818 = vadd.xlane.f32.xlu0 %v791_v26  ;;  %v794_v60 = vmul.f32 %v778_v32, %v762_v14  ;;  %v785_v55 = vmul.f32 %v769_v6, %v753_v30 }
 0x10f   :  { %v793_v1 = vmul.f32 %v777_v18, %v761_v24  ;;  %v795_v12 = vmul.f32 %v779_v4, %v763_v52 }
 0x111   :  { %804 = vadd.xlane.f32.xlu1 %v784_v61 }
 0x112   :  { %814 = vadd.xlane.f32.xlu0 %v789_v47 }
 0x115   :  { %820 = vadd.xlane.f32.xlu1 %v792_v16 }
 0x116   :  { %810 = vadd.xlane.f32.xlu0 %v787_v34 }
 0x119   :  { %824 = vadd.xlane.f32.xlu1 %v794_v60 }
 0x11a   :  { %806 = vadd.xlane.f32.xlu0 %v785_v55 }
 0x11e   :  { %822 = vadd.xlane.f32.xlu0 %v793_v1 }
 0x122   :  { %826 = vadd.xlane.f32.xlu0 %v795_v12 }
 0x18e   :  { %v817_v43 = vpop.xlane.xlu1 %816 }
 0x18f   :  { %839 = vst.msk [vmem:[%s1549_s8 + $0x50] sm:$0xff] %vm828_vm0, %v817_v43  ;;  %v801_v54 = vpop.xlane.xlu0 %800 }
 0x190   :  { %831 = vst.msk [vmem:[%s1549_s8 + $0x10] sm:$0xff] %vm828_vm0, %v801_v54 }
 0x192   :  { %v813_v9 = vpop.xlane.xlu1 %812 }
 0x193   :  { %837 = vst.msk [vmem:[%s1549_s8 + $0x40] sm:$0xff] %vm828_vm0, %v813_v9  ;;  %v797_v17 = vpop.xlane.xlu0 %796 }
 0x194   :  { %829 = vst.msk [vmem:[%s1549_s8] sm:$0xff] %vm828_vm0, %v797_v17 }
 0x196   :  { %v799_v8 = vpop.xlane.xlu1 %798 }
 0x197   :  { %830 = vst.msk [vmem:[%s1549_s8 + $0x8] sm:$0xff] %vm828_vm0, %v799_v8  ;;  %v803_v31 = vpop.xlane.xlu0 %802 }
 0x198   :  { %832 = vst.msk [vmem:[%s1549_s8 + $0x18] sm:$0xff] %vm828_vm0, %v803_v31 }
 0x19a   :  { %v809_v33 = vpop.xlane.xlu1 %808 }
 0x19b   :  { %835 = vst.msk [vmem:[%s1549_s8 + $0x30] sm:$0xff] %vm828_vm0, %v809_v33  ;;  %v819_v7 = vpop.xlane.xlu0 %818 }
 0x19c   :  { %840 = vst.msk [vmem:[%s1549_s8 + $0x58] sm:$0xff] %vm828_vm0, %v819_v7 }
 0x19e   :  { %v805_v15 = vpop.xlane.xlu1 %804 }
 0x19f   :  { %833 = vst.msk [vmem:[%s1549_s8 + $0x20] sm:$0xff] %vm828_vm0, %v805_v15  ;;  %v815_v35 = vpop.xlane.xlu0 %814 }
 0x1a0   :  { %838 = vst.msk [vmem:[%s1549_s8 + $0x48] sm:$0xff] %vm828_vm0, %v815_v35 }
 0x1a2   :  { %v821_v22 = vpop.xlane.xlu1 %820 }
 0x1a3   :  { %841 = vst.msk [vmem:[%s1549_s8 + $0x60] sm:$0xff] %vm828_vm0, %v821_v22  ;;  %v811_v40 = vpop.xlane.xlu0 %810 }
 0x1a4   :  { %836 = vst.msk [vmem:[%s1549_s8 + $0x38] sm:$0xff] %vm828_vm0, %v811_v40 }
 0x1a6   :  { %v825_v20 = vpop.xlane.xlu1 %824 }
 0x1a7   :  { %843 = vst.msk [vmem:[%s1549_s8 + $0x70] sm:$0xff] %vm828_vm0, %v825_v20  ;;  %v807_v36 = vpop.xlane.xlu0 %806 }
 0x1a8   :  { %834 = vst.msk [vmem:[%s1549_s8 + $0x28] sm:$0xff] %vm828_vm0, %v807_v36 }
 0x1ab   :  { %v823_v48 = vpop.xlane.xlu0 %822 }
 0x1ac   :  { %842 = vst.msk [vmem:[%s1549_s8 + $0x68] sm:$0xff] %vm828_vm0, %v823_v48 }
 0x1af   :  { %v827_v45 = vpop.xlane.xlu0 %826 }
 0x1b0   :  { %844 = vst.msk [vmem:[%s1549_s8 + $0x78] sm:$0xff] %vm828_vm0, %v827_v45 }

</bundles_post_ra>
